<compile_context>
chip_gen: v7x
topology: tpu7x:2x2x1
jax: 0.10.0
libtpu: 0.0.40
codegen_flags: <defaults>
</compile_context>

<pallas_src>
import functools

import jax
import jax.numpy as jnp
from jax.experimental import pallas as pl
from jax.experimental.pallas import tpu as pltpu


def _round_up(n, m):
    return ((n + m - 1) // m) * m


def vae_kernel(
    x_ref, eps_ref,
    w1_ref, b1_ref,        # img_2hid   (hidden padded to Hp)
    wms_ref, bms_ref,      # fused hid_2mu || hid_2sigma
    wz_ref, bz_ref,        # z_2hid     (hidden padded to Hp)
    wimg_ref, bimg_ref,    # hid_2img   (hidden rows padded to Hp)
    recon_ref, musig_ref,
):
    latent = eps_ref.shape[-1]

    # x arrives in its native dtype (f32 in the demo); cast to bf16 in-kernel so
    # the wrapper never runs a standalone pad/astype pass over the whole batch.
    x = x_ref[...].astype(jnp.bfloat16)          # (TM, D) bf16 for the MXU
    eps = eps_ref[...].astype(jnp.float32)       # bf16 noise -> f32 reparam math

    # ---- encode ----
    h = jnp.dot(x, w1_ref[...], preferred_element_type=jnp.float32) + b1_ref[...]
    h = jnp.maximum(h, 0.0)                      # ReLU (f32)

    musig = (jnp.dot(h.astype(jnp.bfloat16), wms_ref[...],
                     preferred_element_type=jnp.float32) + bms_ref[...])
    # NOTE: the split at column `latent` (192 in the demo) is not on a 128-lane
    # boundary; the kernel is HBM-bound and VPU/XLU have slack, so we keep the
    # lane-dense 2*latent musig output instead of padding each head to 256.
    mu = musig[:, :latent]
    sigma = musig[:, latent:]

    # ---- reparametrize ----
    z = mu + sigma * eps

    # ---- decode ----
    h2 = (jnp.dot(z.astype(jnp.bfloat16), wz_ref[...],
                  preferred_element_type=jnp.float32) + bz_ref[...])
    h2 = jnp.maximum(h2, 0.0)                    # ReLU (f32)

    logits = (jnp.dot(h2.astype(jnp.bfloat16), wimg_ref[...],
                      preferred_element_type=jnp.float32) + bimg_ref[...])
    recon = jax.nn.sigmoid(logits)               # f32 EUP (safe on v5e too)

    recon_ref[...] = recon.astype(recon_ref.dtype)    # bf16 store: halves writeback
    musig_ref[...] = musig.astype(musig_ref.dtype)


def init_linear(key, in_features, out_features, dtype=jnp.float32):
    """PyTorch nn.Linear default init: U(-1/sqrt(fan_in), 1/sqrt(fan_in)).

    Weight returned already transposed to (in_features, out_features); bias as
    (1, out_features).
    """
    kw, kb = jax.random.split(key)
    bound = 1.0 / jnp.sqrt(jnp.array(in_features, dtype))
    w = jax.random.uniform(kw, (in_features, out_features), dtype, -bound, bound)
    b = jax.random.uniform(kb, (1, out_features), dtype, -bound, bound)
    return w, b


def prepare_params(params):
    """Fuse mu/sigma heads, zero-pad hidden dim to a multiple of 128, cast
    weights to bf16 (biases stay f32 for the f32 epilogue math)."""
    (w1, b1), (wmu, bmu), (wsig, bsig), (wz, bz), (wimg, bimg) = params
    H = w1.shape[1]
    Hp = _round_up(H, 128)
    ph = Hp - H

    wms = jnp.concatenate([wmu, wsig], axis=1)     # (H, 2L)
    bms = jnp.concatenate([bmu, bsig], axis=1)     # (1, 2L)

    w1p = jnp.pad(w1, ((0, 0), (0, ph)))
    b1p = jnp.pad(b1, ((0, 0), (0, ph)))
    wmsp = jnp.pad(wms, ((0, ph), (0, 0)))
    wzp = jnp.pad(wz, ((0, 0), (0, ph)))
    bzp = jnp.pad(bz, ((0, 0), (0, ph)))
    wimgp = jnp.pad(wimg, ((0, ph), (0, 0)))

    bf = jnp.bfloat16
    return (w1p.astype(bf), b1p,
            wmsp.astype(bf), bms,
            wzp.astype(bf), bzp,
            wimgp.astype(bf), bimg)


@functools.partial(jax.jit, static_argnames=("tm",))
def vae_forward(x, eps, prepped, tm=1024):
    w1, b1, wms, bms, wz, bz, wimg, bimg = prepped
    B, D = x.shape
    L = eps.shape[1]
    Hp = w1.shape[1]
    L2 = wms.shape[1]

    # Pad the batch only to a sublane multiple (8); the last grid step may be a
    # partial block — Pallas masks the out-of-bounds writeback.
    Bp = _round_up(B, 8)
    xb = x if Bp == B else jnp.pad(x, ((0, Bp - B), (0, 0)))
    epsb = eps if Bp == B else jnp.pad(eps, ((0, Bp - B), (0, 0)))

    tm_eff = min(tm, Bp)
    # Keep >= 2 grid steps when the batch allows it so the "parallel" batch axis
    # can shard across both TensorCores on v7x (per-step overhead on single-TC
    # v5e/v6e is ~0.35 us, negligible).
    if Bp >= 16 and pl.cdiv(Bp, tm_eff) < 2:
        tm_eff = _round_up(pl.cdiv(Bp, 2), 8)
    grid = (pl.cdiv(Bp, tm_eff),)

    def act_spec(d):
        return pl.BlockSpec((tm_eff, d), lambda i: (i, 0))

    def resident_spec(a):
        # Full-array block with a constant index map: stays in VMEM across the
        # whole grid.
        # TODO(synk): pipeline_mode=pl.Buffered(1) would drop the dead second
        # buffer for these constant operands (VMEM headroom on v7x).
        return pl.BlockSpec(a.shape, lambda i: (0, 0))

    weight_list = (w1, b1, wms, bms, wz, bz, wimg, bimg)
    weight_bytes = sum(int(a.size) * a.dtype.itemsize for a in weight_list)

    flops = 2 * Bp * (D * Hp + Hp * L2 + L * Hp + Hp * D)
    bytes_accessed = (int(xb.size) * xb.dtype.itemsize
                      + int(epsb.size) * epsb.dtype.itemsize
                      + weight_bytes
                      + Bp * D * 2          # recon  (bf16 out)
                      + Bp * L2 * 4)        # mu||sigma (f32 out)
    cost = pl.CostEstimate(flops=flops,
                           transcendentals=Bp * D,   # sigmoid
                           bytes_accessed=bytes_accessed)

    # Explicit scoped-VMEM limit: double-buffered activation tiles + resident
    # weights + headroom. Matters on v5e (16 MiB default) once tiles grow.
    tile_bytes = tm_eff * (D * xb.dtype.itemsize + L * epsb.dtype.itemsize
                           + D * 2 + L2 * 4)
    vmem_limit = 2 * tile_bytes + 2 * weight_bytes + (8 << 20)
    vmem_limit = int(max(32 << 20, min(vmem_limit, 100 << 20)))

    recon, musig = pl.pallas_call(
        vae_kernel,
        out_shape=(jax.ShapeDtypeStruct((Bp, D), jnp.bfloat16),
                   jax.ShapeDtypeStruct((Bp, L2), jnp.float32)),
        grid=grid,
        in_specs=[act_spec(D), act_spec(L),
                  resident_spec(w1), resident_spec(b1),
                  resident_spec(wms), resident_spec(bms),
                  resident_spec(wz), resident_spec(bz),
                  resident_spec(wimg), resident_spec(bimg)],
        out_specs=(act_spec(D), act_spec(L2)),
        compiler_params=pltpu.CompilerParams(
            dimension_semantics=("parallel",),
            vmem_limit_bytes=vmem_limit),
        cost_estimate=cost,
    )(xb, epsb, *weight_list)

    # Slice padding off and split the fused mu||sigma output.
    return recon[:B], musig[:B, :L], musig[:B, L:]


if __name__ == "__main__":
    # Small shapes consistent with the module (scaled-down image dims):
    #   input_dim  = 3 * 16 * 16 = 768
    #   hidden_dim = 32
    #   latent_dim = 3 * 8 * 8   = 192
    B = 2
    input_dim = 3 * 16 * 16
    hidden_dim = 32
    latent_dim = 3 * 8 * 8

    key = jax.random.PRNGKey(0)
    kx, keps, k1, k2, k3, k4, k5 = jax.random.split(key, 7)

    x = jax.random.uniform(kx, (B, input_dim), jnp.float32)      # flattened images
    # TODO(synk): torch.randn_like(sigma) is generated host-side with jax.random
    # (bf16, since it is pure noise) and passed in; generating it in-kernel with
    # pltpu.prng_* would remove this input stream entirely.
    eps = jax.random.normal(keps, (B, latent_dim), jnp.bfloat16)

    params = (
        init_linear(k1, input_dim, hidden_dim),    # img_2hid
        init_linear(k2, hidden_dim, latent_dim),   # hid_2mu
        init_linear(k3, hidden_dim, latent_dim),   # hid_2sigma
        init_linear(k4, latent_dim, hidden_dim),   # z_2hid
        init_linear(k5, hidden_dim, input_dim),    # hid_2img
    )
    prepped = prepare_params(params)

    recon, mu, sigma = vae_forward(x, eps, prepped)
    jax.block_until_ready((recon, mu, sigma))

    # Reference in plain JAX f32 with the original (unfused, unpadded) params.
    (w1, b1), (wmu, bmu), (wsig, bsig), (wz, bz), (wimg, bimg) = params
    eps_f32 = eps.astype(jnp.float32)
    h_ref = jnp.maximum(x @ w1 + b1, 0.0)
    mu_ref = h_ref @ wmu + bmu
    sigma_ref = h_ref @ wsig + bsig
    z_ref = mu_ref + sigma_ref * eps_f32
    h2_ref = jnp.maximum(z_ref @ wz + bz, 0.0)
    recon_ref = jax.nn.sigmoid(h2_ref @ wimg + bimg)

    assert recon.shape == (B, input_dim) and recon.dtype == jnp.bfloat16
    assert mu.shape == (B, latent_dim)
    assert sigma.shape == (B, latent_dim)
    # bf16 weights/activations with f32 accumulation (and bf16 recon store) ->
    # loose-but-tight-enough tolerances.
    assert jnp.allclose(mu, mu_ref, atol=2e-2, rtol=2e-2)
    assert jnp.allclose(sigma, sigma_ref, atol=2e-2, rtol=2e-2)
    assert jnp.allclose(recon.astype(jnp.float32), recon_ref, atol=2e-2, rtol=2e-2)

    print("KERNEL_OK")
</pallas_src>

<mosaic_0001>
module attributes {stable_mosaic.version = 11 : i64} {
  func.func @vae_kernel(%arg0: i32, %arg1: memref<8x768xf32, #tpu.memory_space<vmem>>, %arg2: memref<8x192xbf16, #tpu.memory_space<vmem>>, %arg3: memref<768x128xbf16, #tpu.memory_space<vmem>>, %arg4: memref<1x128xf32, #tpu.memory_space<vmem>>, %arg5: memref<128x384xbf16, #tpu.memory_space<vmem>>, %arg6: memref<1x384xf32, #tpu.memory_space<vmem>>, %arg7: memref<192x128xbf16, #tpu.memory_space<vmem>>, %arg8: memref<1x128xf32, #tpu.memory_space<vmem>>, %arg9: memref<128x768xbf16, #tpu.memory_space<vmem>>, %arg10: memref<1x768xf32, #tpu.memory_space<vmem>>, %arg11: memref<8x768xbf16, #tpu.memory_space<vmem>>, %arg12: memref<8x384xf32, #tpu.memory_space<vmem>>) attributes {dimension_semantics = [#tpu.dimension_semantics<parallel>], iteration_bounds = array<i64: 1>, scalar_prefetch = 0 : i64, scratch_operands = 0 : i64, tpu.core_type = #tpu.core_type<tc>, window_params = [{transform_indices = @transform_0, window_bounds = array<i64: 8, 768>}, {transform_indices = @transform_1, window_bounds = array<i64: 8, 192>}, {pipeline_mode = #tpu.pipeline_mode<synchronous>, transform_indices = @transform_2, window_bounds = array<i64: 768, 128>}, {pipeline_mode = #tpu.pipeline_mode<synchronous>, transform_indices = @transform_3, window_bounds = array<i64: 1, 128>}, {pipeline_mode = #tpu.pipeline_mode<synchronous>, transform_indices = @transform_4, window_bounds = array<i64: 128, 384>}, {pipeline_mode = #tpu.pipeline_mode<synchronous>, transform_indices = @transform_5, window_bounds = array<i64: 1, 384>}, {pipeline_mode = #tpu.pipeline_mode<synchronous>, transform_indices = @transform_6, window_bounds = array<i64: 192, 128>}, {pipeline_mode = #tpu.pipeline_mode<synchronous>, transform_indices = @transform_7, window_bounds = array<i64: 1, 128>}, {pipeline_mode = #tpu.pipeline_mode<synchronous>, transform_indices = @transform_8, window_bounds = array<i64: 128, 768>}, {pipeline_mode = #tpu.pipeline_mode<synchronous>, transform_indices = @transform_9, window_bounds = array<i64: 1, 768>}, {transform_indices = @transform_10, window_bounds = array<i64: 8, 768>}, {transform_indices = @transform_11, window_bounds = array<i64: 8, 384>}]} {
    %c0 = arith.constant 0 : index
    %c0_0 = arith.constant 0 : index
    %0 = vector.load %arg1[%c0, %c0_0] : memref<8x768xf32, #tpu.memory_space<vmem>>, vector<8x768xf32>
    %1 = arith.truncf %0 : vector<8x768xf32> to vector<8x768xbf16>
    %c0_1 = arith.constant 0 : index
    %c0_2 = arith.constant 0 : index
    %2 = vector.load %arg2[%c0_1, %c0_2] : memref<8x192xbf16, #tpu.memory_space<vmem>>, vector<8x192xbf16>
    %3 = arith.extf %2 : vector<8x192xbf16> to vector<8x192xf32>
    %c0_3 = arith.constant 0 : index
    %c0_4 = arith.constant 0 : index
    %4 = vector.load %arg3[%c0_3, %c0_4] : memref<768x128xbf16, #tpu.memory_space<vmem>>, vector<768x128xbf16>
    %cst = arith.constant dense<0.000000e+00> : vector<8x128xf32>
    %5 = tpu.matmul %1, %4, %cst {dimension_numbers = #tpu.dot_dimension_numbers<[1], [0], [0], [1], [0, 0, 1, 1], [], []>} : vector<8x768xbf16>, vector<768x128xbf16>, vector<8x128xf32> -> vector<8x128xf32>
    %c0_5 = arith.constant 0 : index
    %c0_6 = arith.constant 0 : index
    %6 = vector.load %arg4[%c0_5, %c0_6] : memref<1x128xf32, #tpu.memory_space<vmem>>, vector<1x128xf32>
    %7 = vector.broadcast %6 : vector<1x128xf32> to vector<8x128xf32>
    %8 = arith.addf %5, %7 : vector<8x128xf32>
    %cst_7 = arith.constant 0.000000e+00 : f32
    %9 = vector.broadcast %cst_7 : f32 to vector<8x128xf32>
    %10 = arith.maximumf %8, %9 : vector<8x128xf32>
    %11 = arith.truncf %10 : vector<8x128xf32> to vector<8x128xbf16>
    %c0_8 = arith.constant 0 : index
    %c0_9 = arith.constant 0 : index
    %12 = vector.load %arg5[%c0_8, %c0_9] : memref<128x384xbf16, #tpu.memory_space<vmem>>, vector<128x384xbf16>
    %cst_10 = arith.constant dense<0.000000e+00> : vector<8x384xf32>
    %13 = tpu.matmul %11, %12, %cst_10 {dimension_numbers = #tpu.dot_dimension_numbers<[1], [0], [0], [1], [0, 0, 1, 1], [], []>} : vector<8x128xbf16>, vector<128x384xbf16>, vector<8x384xf32> -> vector<8x384xf32>
    %c0_11 = arith.constant 0 : index
    %c0_12 = arith.constant 0 : index
    %14 = vector.load %arg6[%c0_11, %c0_12] : memref<1x384xf32, #tpu.memory_space<vmem>>, vector<1x384xf32>
    %15 = vector.broadcast %14 : vector<1x384xf32> to vector<8x384xf32>
    %16 = arith.addf %13, %15 : vector<8x384xf32>
    %17 = vector.extract_strided_slice %16 {offsets = [0, 0], sizes = [8, 192], strides = [1, 1]} : vector<8x384xf32> to vector<8x192xf32>
    %18 = vector.extract_strided_slice %16 {offsets = [0, 192], sizes = [8, 192], strides = [1, 1]} : vector<8x384xf32> to vector<8x192xf32>
    %19 = arith.mulf %18, %3 : vector<8x192xf32>
    %20 = arith.addf %17, %19 : vector<8x192xf32>
    %21 = arith.truncf %20 : vector<8x192xf32> to vector<8x192xbf16>
    %c0_13 = arith.constant 0 : index
    %c0_14 = arith.constant 0 : index
    %22 = vector.load %arg7[%c0_13, %c0_14] : memref<192x128xbf16, #tpu.memory_space<vmem>>, vector<192x128xbf16>
    %cst_15 = arith.constant dense<0.000000e+00> : vector<8x128xf32>
    %23 = tpu.matmul %21, %22, %cst_15 {dimension_numbers = #tpu.dot_dimension_numbers<[1], [0], [0], [1], [0, 0, 1, 1], [], []>} : vector<8x192xbf16>, vector<192x128xbf16>, vector<8x128xf32> -> vector<8x128xf32>
    %c0_16 = arith.constant 0 : index
    %c0_17 = arith.constant 0 : index
    %24 = vector.load %arg8[%c0_16, %c0_17] : memref<1x128xf32, #tpu.memory_space<vmem>>, vector<1x128xf32>
    %25 = vector.broadcast %24 : vector<1x128xf32> to vector<8x128xf32>
    %26 = arith.addf %23, %25 : vector<8x128xf32>
    %cst_18 = arith.constant 0.000000e+00 : f32
    %27 = vector.broadcast %cst_18 : f32 to vector<8x128xf32>
    %28 = arith.maximumf %26, %27 : vector<8x128xf32>
    %29 = arith.truncf %28 : vector<8x128xf32> to vector<8x128xbf16>
    %c0_19 = arith.constant 0 : index
    %c0_20 = arith.constant 0 : index
    %30 = vector.load %arg9[%c0_19, %c0_20] : memref<128x768xbf16, #tpu.memory_space<vmem>>, vector<128x768xbf16>
    %cst_21 = arith.constant dense<0.000000e+00> : vector<8x768xf32>
    %31 = tpu.matmul %29, %30, %cst_21 {dimension_numbers = #tpu.dot_dimension_numbers<[1], [0], [0], [1], [0, 0, 1, 1], [], []>} : vector<8x128xbf16>, vector<128x768xbf16>, vector<8x768xf32> -> vector<8x768xf32>
    %c0_22 = arith.constant 0 : index
    %c0_23 = arith.constant 0 : index
    %32 = vector.load %arg10[%c0_22, %c0_23] : memref<1x768xf32, #tpu.memory_space<vmem>>, vector<1x768xf32>
    %33 = vector.broadcast %32 : vector<1x768xf32> to vector<8x768xf32>
    %34 = arith.addf %31, %33 : vector<8x768xf32>
    %35 = arith.negf %34 : vector<8x768xf32>
    %36 = math.exp %35 : vector<8x768xf32>
    %cst_24 = arith.constant 1.000000e+00 : f32
    %37 = vector.broadcast %cst_24 : f32 to vector<8x768xf32>
    %38 = arith.addf %37, %36 : vector<8x768xf32>
    %39 = arith.divf %37, %38 : vector<8x768xf32>
    %40 = arith.truncf %39 : vector<8x768xf32> to vector<8x768xbf16>
    %c0_25 = arith.constant 0 : index
    %c0_26 = arith.constant 0 : index
    %41 = vector.load %arg11[%c0_25, %c0_26] : memref<8x768xbf16, #tpu.memory_space<vmem>>, vector<8x768xbf16>
    tpu.vector_store %arg11[%c0_25, %c0_26], %40 {strides = array<i32>} : memref<8x768xbf16, #tpu.memory_space<vmem>>, vector<8x768xbf16>,
    %c0_27 = arith.constant 0 : index
    %c0_28 = arith.constant 0 : index
    %42 = vector.load %arg12[%c0_27, %c0_28] : memref<8x384xf32, #tpu.memory_space<vmem>>, vector<8x384xf32>
    tpu.vector_store %arg12[%c0_27, %c0_28], %16 {strides = array<i32>} : memref<8x384xf32, #tpu.memory_space<vmem>>, vector<8x384xf32>,
    return
  }
  func.func @transform_0(%arg0: i32) -> (i32, i32) {
    %c0_i32 = arith.constant 0 : i32
    %c0_i32_0 = arith.constant 0 : i32
    return %arg0, %c0_i32 : i32, i32
  }
  func.func @transform_1(%arg0: i32) -> (i32, i32) {
    %c0_i32 = arith.constant 0 : i32
    %c0_i32_0 = arith.constant 0 : i32
    return %arg0, %c0_i32 : i32, i32
  }
  func.func @transform_2(%arg0: i32) -> (i32, i32) {
    %c0_i32 = arith.constant 0 : i32
    %c0_i32_0 = arith.constant 0 : i32
    %c0_i32_1 = arith.constant 0 : i32
    return %c0_i32, %c0_i32_0 : i32, i32
  }
  func.func @transform_3(%arg0: i32) -> (i32, i32) {
    %c0_i32 = arith.constant 0 : i32
    %c0_i32_0 = arith.constant 0 : i32
    %c0_i32_1 = arith.constant 0 : i32
    return %c0_i32, %c0_i32_0 : i32, i32
  }
  func.func @transform_4(%arg0: i32) -> (i32, i32) {
    %c0_i32 = arith.constant 0 : i32
    %c0_i32_0 = arith.constant 0 : i32
    %c0_i32_1 = arith.constant 0 : i32
    return %c0_i32, %c0_i32_0 : i32, i32
  }
  func.func @transform_5(%arg0: i32) -> (i32, i32) {
    %c0_i32 = arith.constant 0 : i32
    %c0_i32_0 = arith.constant 0 : i32
    %c0_i32_1 = arith.constant 0 : i32
    return %c0_i32, %c0_i32_0 : i32, i32
  }
  func.func @transform_6(%arg0: i32) -> (i32, i32) {
    %c0_i32 = arith.constant 0 : i32
    %c0_i32_0 = arith.constant 0 : i32
    %c0_i32_1 = arith.constant 0 : i32
    return %c0_i32, %c0_i32_0 : i32, i32
  }
  func.func @transform_7(%arg0: i32) -> (i32, i32) {
    %c0_i32 = arith.constant 0 : i32
    %c0_i32_0 = arith.constant 0 : i32
    %c0_i32_1 = arith.constant 0 : i32
    return %c0_i32, %c0_i32_0 : i32, i32
  }
  func.func @transform_8(%arg0: i32) -> (i32, i32) {
    %c0_i32 = arith.constant 0 : i32
    %c0_i32_0 = arith.constant 0 : i32
    %c0_i32_1 = arith.constant 0 : i32
    return %c0_i32, %c0_i32_0 : i32, i32
  }
  func.func @transform_9(%arg0: i32) -> (i32, i32) {
    %c0_i32 = arith.constant 0 : i32
    %c0_i32_0 = arith.constant 0 : i32
    %c0_i32_1 = arith.constant 0 : i32
    return %c0_i32, %c0_i32_0 : i32, i32
  }
  func.func @transform_10(%arg0: i32) -> (i32, i32) {
    %c0_i32 = arith.constant 0 : i32
    %c0_i32_0 = arith.constant 0 : i32
    return %arg0, %c0_i32 : i32, i32
  }
  func.func @transform_11(%arg0: i32) -> (i32, i32) {
    %c0_i32 = arith.constant 0 : i32
    %c0_i32_0 = arith.constant 0 : i32
    return %arg0, %c0_i32 : i32, i32
  }
}

</mosaic_0001>

<bundles_post_ra>
// kernel: vae_forward.1
= control target key start
LH: loop header
LB: loop body
LE: loop exit
PB: predicated region body
PF: predicated region fallthrough
CT: control target
= control target key end

     0   :  { %17 = vsyncpa [#allocation3], 0  ;;  %s2339_s0 = inlined_call_operand.vmem [shape: f32[8,768], index: 0, kind: input, shape index: {}]   ;;  %s2340_s1 = inlined_call_operand.vmem [shape: bf16[8,192], index: 1, kind: input, shape index: {}]   ;;  %s2341_s2 = inlined_call_operand.hbm [shape: bf16[768,128], index: 2, kind: input, shape index: {}]   ;;  %s2342_s3 = inlined_call_operand.vmem [shape: f32[1,128], index: 3, kind: input, shape index: {}]   ;;  %s2343_s4 = inlined_call_operand.hbm [shape: bf16[128,384], index: 4, kind: input, shape index: {}]   ;;  %s2344_s5 = inlined_call_operand.vmem [shape: f32[1,384], index: 5, kind: input, shape index: {}]   ;;  %s2345_s6 = inlined_call_operand.hbm [shape: bf16[192,128], index: 6, kind: input, shape index: {}]   ;;  %s2346_s7 = inlined_call_operand.vmem [shape: f32[1,128], index: 7, kind: input, shape index: {}]   ;;  %s2347_s8 = inlined_call_operand.hbm [shape: bf16[128,768], index: 8, kind: input, shape index: {}]   ;;  %s2348_s9 = inlined_call_operand.vmem [shape: f32[1,768], index: 9, kind: input, shape index: {}]   ;;  %s2349_s10 = inlined_call_operand.vmem [shape: bf16[8,768], index: 10, kind: output, shape index: {0}]   ;;  %s2350_s11 = inlined_call_operand.vmem [shape: f32[8,384], index: 11, kind: output, shape index: {1}]  }
   0x1   :  { %18 = vsyncpa [#allocation5], 0 }
   0x2   :  { %19 = vsyncpa [#allocation8], 0  ;;  %s2114_s17 = smov [#allocation4]   ;;  %s2020_s21 = scalar_lea.hbm %s2343_s4, 3072 }
   0x3   :  { %s43_s18 = sshll.u32 %s2114_s17, 4  ;;  %p2021_p0 = scmp.ne.s32.totalorder %s2343_s4, %s2020_s21  ;;  %s44_s18 = int_to_ptr.vmem [resolvable:$true] %s43_s18 }
   0x4   :  { %p2024_p1 = scmp.lt.u32.totalorder %s2020_s21, %s2343_s4 }
   0x6   :  { %p2026_p2 = pnand %p2024_p1, %p2021_p0 }
   0x8   :  { %2029 = shalt.err (!%p2026_p2)
}
   0x9   :  { %s2030_s26 = scalar_lea.vmem %s44_s18, 3072  ;;  %p2035_p4 = scmp.lt.s32.totalorder %s44_s18, %s44_s18 }
   0xa   :  { %p2031_p3 = scmp.ne.s32.totalorder %s44_s18, %s2030_s26  ;;  %p2036_p5 = scmp.lt.s32.totalorder %s2030_s26, %s2030_s26 }
   0xc   :  { %p2037_p6 = por %p2036_p5, %p2035_p4 }
   0xe   :  { %p2038_p7 = pnand %p2037_p6, %p2031_p3 }
  0x10   :  { %2041 = shalt.err (!%p2038_p7)
}
  0x11   :  { %s2115_s27 = smov 192   ;;  %s2116_s28 = smov 12  }
  0x12   :  { %49 = dma.hbm_to_vmem [thread:$0]  %s2343_s4, 3072, %s44_s18, [#allocation5], %s2115_s27, %s2115_s27, %s2116_s28  }
  0x13   :  { %s2117_s12 = smov [#allocation2]   ;;  %s2042_s16 = scalar_lea.hbm %s2341_s2, 6144 }
  0x14   :  { %s29_s13 = sshll.u32 %s2117_s12, 4  ;;  %p2043_p8 = scmp.ne.s32.totalorder %s2341_s2, %s2042_s16  ;;  %s30_s13 = int_to_ptr.vmem [resolvable:$true] %s29_s13 }
  0x15   :  { %p2046_p9 = scmp.lt.u32.totalorder %s2042_s16, %s2341_s2 }
  0x17   :  { %p2048_p10 = pnand %p2046_p9, %p2043_p8 }
  0x19   :  { %2051 = shalt.err (!%p2048_p10)
}
  0x1a   :  { %s2052_s22 = scalar_lea.vmem %s30_s13, 6144  ;;  %p2057_p12 = scmp.lt.s32.totalorder %s30_s13, %s30_s13 }
  0x1b   :  { %p2053_p11 = scmp.ne.s32.totalorder %s30_s13, %s2052_s22  ;;  %p2058_p13 = scmp.lt.s32.totalorder %s2052_s22, %s2052_s22 }
  0x1d   :  { %p2059_p0 = por %p2058_p13, %p2057_p12 }
  0x1f   :  { %p2060_p1 = pnand %p2059_p0, %p2053_p11 }
  0x21   :  { %2063 = shalt.err (!%p2060_p1)
}
  0x22   :  { %s2118_s4 = smov 64   ;;  %s2119_s18 = smov 4  }
  0x23   :  { %35 = dma.hbm_to_vmem [thread:$0]  %s2341_s2, 6144, %s30_s13, [#allocation3], %s2118_s4, %s2118_s4, %s2119_s18  }
  0x24   :  { %s2120_s25 = smov [#allocation6]   ;;  %s2121_s27 = smov [#allocation7]  }
  0x25   :  { %s57_s26 = sshll.u32 %s2120_s25, 4  ;;  %s71_s28 = sshll.u32 %s2121_s27, 4  ;;  %s58_s26 = int_to_ptr.vmem [resolvable:$true] %s57_s26  ;;  %s2213_s28 = int_to_ptr.vmem [resolvable:$true] %s71_s28 }
  0x26   :  { %s2064_s12 = scalar_lea.hbm %s2345_s6, 1536 }
  0x27   :  { %p2065_p2 = scmp.ne.s32.totalorder %s2345_s6, %s2064_s12  ;;  %p2068_p3 = scmp.lt.u32.totalorder %s2064_s12, %s2345_s6 }
  0x29   :  { %p2070_p4 = pnand %p2068_p3, %p2065_p2 }
  0x2b   :  { %2073 = shalt.err (!%p2070_p4)
}
  0x2c   :  { %s2074_s2 = scalar_lea.vmem %s58_s26, 1536  ;;  %p2079_p6 = scmp.lt.s32.totalorder %s58_s26, %s58_s26 }
  0x2d   :  { %p2075_p5 = scmp.ne.s32.totalorder %s58_s26, %s2074_s2  ;;  %p2080_p7 = scmp.lt.s32.totalorder %s2074_s2, %s2074_s2 }
  0x2f   :  { %p2081_p8 = por %p2080_p7, %p2079_p6 }
  0x31   :  { %p2082_p9 = pnand %p2081_p8, %p2075_p5 }
  0x33   :  { %2085 = shalt.err (!%p2082_p9)
}
  0x34   :  { %63 = dma.hbm_to_vmem [thread:$0]  %s2345_s6, 1536, %s58_s26, [#allocation5], %s2118_s4, %s2118_s4, %s2119_s18  }
  0x35   :  { %s2086_s22 = scalar_lea.hbm %s2347_s8, 6144 }
  0x36   :  { %p2087_p10 = scmp.ne.s32.totalorder %s2347_s8, %s2086_s22  ;;  %p2090_p11 = scmp.lt.u32.totalorder %s2086_s22, %s2347_s8 }
  0x38   :  { %p2092_p12 = pnand %p2090_p11, %p2087_p10 }
  0x3a   :  { %2095 = shalt.err (!%p2092_p12)
}
  0x3b   :  { %s2096_s29 = scalar_lea.vmem %s2213_s28, 6144  ;;  %p2101_p0 = scmp.lt.s32.totalorder %s2213_s28, %s2213_s28 }
  0x3c   :  { %p2097_p13 = scmp.ne.s32.totalorder %s2213_s28, %s2096_s29  ;;  %p2102_p1 = scmp.lt.s32.totalorder %s2096_s29, %s2096_s29 }
  0x3e   :  { %p2103_p2 = por %p2102_p1, %p2101_p0 }
  0x40   :  { %p2104_p3 = pnand %p2103_p2, %p2097_p13 }
  0x42   :  { %2107 = shalt.err (!%p2104_p3)
}
  0x43   :  { %s2122_s6 = smov 384   ;;  %s2123_s18 = smov 24  }
  0x44   :  { %77 = dma.hbm_to_vmem [thread:$0]  %s2347_s8, 6144, %s2213_s28, [#allocation8], %s2122_s6, %s2122_s6, %s2123_s18  }
  0x45   :  { %2108 = dma.done.wait [#allocation3], 6144  }
  0x46   :  { %2109 = vsyncadd [#allocation3], 4294961152 }
  0x47   :  { %2110 = dma.done.wait [#allocation5], 4608  }
  0x48   :  { %2111 = vsyncadd [#allocation5], 4294962688 }
  0x49   :  { %2112 = dma.done.wait [#allocation8], 6144  }
  0x4a   :  { %2113 = vsyncadd [#allocation8], 4294961152  ;;  %v1832_v0 = vld [vmem:[#allocation2 + $0x40] sm:$0xff]   ;;  %v1836_v4 = vld [vmem:[#allocation2 + $0x48] sm:$0xff]   ;;  %v2124_v62 = vmov 0.0   ;;  %vm2126_vm0 = vmmov 0  }
  0x4b   :  { %v1833_v1 = vld [vmem:[#allocation2] sm:$0xff]   ;;  %1719 = vmatprep.subr.bf16.mxu0 %v1832_v0  ;;  %v1837_v5 = vld [vmem:[#allocation2 + $0x8] sm:$0xff]   ;;  %v1840_v8 = vld [vmem:[#allocation2 + $0x50] sm:$0xff]   ;;  %vm885_vm1 = vcmask 523264  }
  0x4c   :  { %v1834_v2 = vld [vmem:[#allocation2 + $0xc0] sm:$0xff]   ;;  %1720 = vmatpush3.bf16.msra.mxu0 %v1833_v1  ;;  %v1838_v6 = vld [vmem:[#allocation2 + $0xc8] sm:$0xff]   ;;  %v1841_v9 = vld [vmem:[#allocation2 + $0x10] sm:$0xff]  }
  0x4d   :  { %v1835_v3 = vld [vmem:[#allocation2 + $0x80] sm:$0xff]   ;;  %1741 = vmatprep.subr.bf16.mxu1 %v1834_v2  ;;  %1721 = vmatprep.subr.bf16.mxu0 %v1836_v4  ;;  %v1839_v7 = vld [vmem:[#allocation2 + $0x88] sm:$0xff]   ;;  %v1842_v10 = vld [vmem:[#allocation2 + $0xd0] sm:$0xff]  }
  0x4e   :  { %1742 = vmatpush3.bf16.msra.mxu1 %v1835_v3  ;;  %v1843_v11 = vld [vmem:[#allocation2 + $0x90] sm:$0xff]   ;;  %v1844_v12 = vld [vmem:[#allocation2 + $0x58] sm:$0xff]   ;;  %v1848_v16 = vld [vmem:[#allocation2 + $0x60] sm:$0xff]  }
  0x4f   :  { %1743 = vmatprep.subr.bf16.mxu1 %v1838_v6  ;;  %v1845_v13 = vld [vmem:[#allocation2 + $0x18] sm:$0xff]   ;;  %v1849_v17 = vld [vmem:[#allocation2 + $0x20] sm:$0xff]   ;;  %v1852_v20 = vld [vmem:[#allocation2 + $0x68] sm:$0xff]  }
  0x50   :  { %1722 = vmatpush3.bf16.msra.mxu0 %v1837_v5  ;;  %v1846_v14 = vld [vmem:[#allocation2 + $0xd8] sm:$0xff]   ;;  %v1850_v18 = vld [vmem:[#allocation2 + $0xe0] sm:$0xff]   ;;  %v1853_v21 = vld [vmem:[#allocation2 + $0x28] sm:$0xff]  }
  0x51   :  { %1723 = vmatprep.subr.bf16.mxu0 %v1840_v8  ;;  %v1847_v15 = vld [vmem:[#allocation2 + $0x98] sm:$0xff]   ;;  %v1851_v19 = vld [vmem:[#allocation2 + $0xa0] sm:$0xff]   ;;  %v1854_v22 = vld [vmem:[#allocation2 + $0xe8] sm:$0xff]  }
  0x52   :  { %1744 = vmatpush3.bf16.msra.mxu1 %v1839_v7  ;;  %v1855_v23 = vld [vmem:[#allocation2 + $0xa8] sm:$0xff]   ;;  %v1856_v24 = vld [vmem:[#allocation2 + $0x70] sm:$0xff]   ;;  %v1860_v28 = vld [vmem:[#allocation2 + $0x78] sm:$0xff]  }
  0x53   :  { %1745 = vmatprep.subr.bf16.mxu1 %v1842_v10  ;;  %v1857_v25 = vld [vmem:[#allocation2 + $0x30] sm:$0xff]   ;;  %v1861_v29 = vld [vmem:[#allocation2 + $0x38] sm:$0xff]   ;;  %v94_v31 = vld [vmem:[%s2339_s0 + $0x8] sm:$0xff] }
  0x54   :  { %1724 = vmatpush3.bf16.msra.mxu0 %v1841_v9  ;;  %v1858_v26 = vld [vmem:[#allocation2 + $0xf0] sm:$0xff]   ;;  %v1862_v30 = vld [vmem:[#allocation2 + $0xf8] sm:$0xff]   ;;  %v100_v32 = vpack.c.bf16 %v94_v31, %v94_v31  ;;  %v93_v34 = vld [vmem:[%s2339_s0] sm:$0xff] }
  0x55   :  { %1725 = vmatprep.subr.bf16.mxu0 %v1844_v12  ;;  %v1859_v27 = vld [vmem:[#allocation2 + $0xb0] sm:$0xff]   ;;  %v1863_v33 = vld [vmem:[#allocation2 + $0xb8] sm:$0xff]   ;;  %v99_v35 = vpack.c.bf16 %v93_v34, %v93_v34  ;;  %v1864_v36 = vld [vmem:[#allocation2 + $0x140] sm:$0xff]  }
  0x56   :  { %1746 = vmatpush3.bf16.msra.mxu1 %v1843_v11  ;;  %v96_v37 = vld [vmem:[%s2339_s0 + $0x18] sm:$0xff]  ;;  %531 = vmatprep.mubr.bf16.mxu0 %v100_v32  ;;  %v1865_v39 = vld [vmem:[#allocation2 + $0x100] sm:$0xff]   ;;  %v95_v40 = vld [vmem:[%s2339_s0 + $0x10] sm:$0xff] }
  0x57   :  { %1747 = vmatprep.subr.bf16.mxu1 %v1846_v14  ;;  %v102_v38 = vpack.c.bf16 %v96_v37, %v96_v37  ;;  %v101_v41 = vpack.c.bf16 %v95_v40, %v95_v40  ;;  %v1866_v42 = vld [vmem:[#allocation2 + $0x148] sm:$0xff]   ;;  %v1868_v44 = vld [vmem:[#allocation2 + $0x150] sm:$0xff]   ;;  %v1870_v46 = vld [vmem:[#allocation2 + $0x158] sm:$0xff]  }
  0x58   :  { %1726 = vmatpush3.bf16.msra.mxu0 %v1845_v13  ;;  %v1867_v43 = vld [vmem:[#allocation2 + $0x108] sm:$0xff]   ;;  %v1869_v45 = vld [vmem:[#allocation2 + $0x110] sm:$0xff]   ;;  %v1871_v47 = vld [vmem:[#allocation2 + $0x118] sm:$0xff]  }
  0x59   :  { %1727 = vmatprep.subr.bf16.mxu0 %v1848_v16  ;;  %571 = vmatprep.mubr.bf16.mxu1 %v102_v38  ;;  %v1872_v48 = vld [vmem:[#allocation2 + $0x160] sm:$0xff]   ;;  %v1874_v50 = vld [vmem:[#allocation2 + $0x168] sm:$0xff]   ;;  %v1876_v54 = vld [vmem:[#allocation2 + $0x170] sm:$0xff]  }
  0x5a   :  { %1748 = vmatpush3.bf16.msra.mxu1 %v1847_v15  ;;  %v1873_v49 = vld [vmem:[#allocation2 + $0x120] sm:$0xff]   ;;  %v98_v51 = vld [vmem:[%s2339_s0 + $0x28] sm:$0xff]  ;;  %v1877_v55 = vld [vmem:[#allocation2 + $0x130] sm:$0xff]  }
  0x5b   :  { %1749 = vmatprep.subr.bf16.mxu1 %v1850_v18  ;;  %v1875_v52 = vld [vmem:[#allocation2 + $0x128] sm:$0xff]   ;;  %v104_v53 = vpack.c.bf16 %v98_v51, %v98_v51  ;;  %v1878_v56 = vld [vmem:[#allocation2 + $0x178] sm:$0xff]   ;;  %v97_v58 = vld [vmem:[%s2339_s0 + $0x20] sm:$0xff] }
  0x5c   :  { %1728 = vmatpush3.bf16.msra.mxu0 %v1849_v17  ;;  %v1879_v57 = vld [vmem:[#allocation2 + $0x138] sm:$0xff]   ;;  %v103_v59 = vpack.c.bf16 %v97_v58, %v97_v58  ;;  %v1880_v60 = vld [vmem:[#allocation4] ss:$12 sps:$4 sm:$0xff]   ;;  %v1882_v61 = vld [vmem:[#allocation4 + $0x4] ss:$12 sps:$4 sm:$0xff]  }
  0x5d   :  { %1729 = vmatprep.subr.bf16.mxu0 %v1852_v20  ;;  %v1883_v63 = vld [vmem:[#allocation4 + $0x8] ss:$12 sps:$4 sm:$0xff]   ;;  %v1884_v1 = vld [vmem:[#allocation4 + $0x18] ss:$12 sps:$4 sm:$0xff]   ;;  %v1887_v2 = vld [vmem:[#allocation4 + $0x20] ss:$12 sps:$4 sm:$0xff]  }
  0x5e   :  { %1750 = vmatpush3.bf16.msra.mxu1 %v1851_v19  ;;  %v1886_v0 = vld [vmem:[#allocation4 + $0x1c] ss:$12 sps:$4 sm:$0xff]   ;;  %v1890_v3 = vld [vmem:[#allocation4 + $0x34] ss:$12 sps:$4 sm:$0xff]   ;;  %v1891_v5 = vld [vmem:[#allocation4 + $0x38] ss:$12 sps:$4 sm:$0xff]  }
  0x5f   :  { %1751 = vmatprep.subr.bf16.mxu1 %v1854_v22  ;;  %v1888_v4 = vld [vmem:[#allocation4 + $0x30] ss:$12 sps:$4 sm:$0xff]   ;;  %v1894_v6 = vld [vmem:[#allocation4 + $0x4c] ss:$12 sps:$4 sm:$0xff]   ;;  %v1892_v7 = vld [vmem:[#allocation4 + $0x48] ss:$12 sps:$4 sm:$0xff]  }
  0x60   :  { %1730 = vmatpush3.bf16.msra.mxu0 %v1853_v21  ;;  %v1895_v8 = vld [vmem:[#allocation4 + $0x50] ss:$12 sps:$4 sm:$0xff]   ;;  %v1896_v10 = vld [vmem:[#allocation4 + $0x60] ss:$12 sps:$4 sm:$0xff]   ;;  %v1899_v11 = vld [vmem:[#allocation4 + $0x68] ss:$12 sps:$4 sm:$0xff]  }
  0x61   :  { %1731 = vmatprep.subr.bf16.mxu0 %v1856_v24  ;;  %v1898_v9 = vld [vmem:[#allocation4 + $0x64] ss:$12 sps:$4 sm:$0xff]   ;;  %v1902_v12 = vld [vmem:[#allocation4 + $0x7c] ss:$12 sps:$4 sm:$0xff]   ;;  %v1903_v14 = vld [vmem:[#allocation4 + $0x80] ss:$12 sps:$4 sm:$0xff]  }
  0x62   :  { %1752 = vmatpush3.bf16.msra.mxu1 %v1855_v23  ;;  %v1900_v13 = vld [vmem:[#allocation4 + $0x78] ss:$12 sps:$4 sm:$0xff]   ;;  %v1906_v15 = vld [vmem:[#allocation4 + $0x94] ss:$12 sps:$4 sm:$0xff]   ;;  %v1904_v16 = vld [vmem:[#allocation4 + $0x90] ss:$12 sps:$4 sm:$0xff]  }
  0x63   :  { %1753 = vmatprep.subr.bf16.mxu1 %v1858_v26  ;;  %v1907_v17 = vld [vmem:[#allocation4 + $0x98] ss:$12 sps:$4 sm:$0xff]   ;;  %v1908_v19 = vld [vmem:[#allocation4 + $0xa8] ss:$12 sps:$4 sm:$0xff]   ;;  %v1911_v20 = vld [vmem:[#allocation4 + $0xb0] ss:$12 sps:$4 sm:$0xff]  }
  0x64   :  { %1732 = vmatpush3.bf16.msra.mxu0 %v1857_v25  ;;  %v1910_v18 = vld [vmem:[#allocation4 + $0xac] ss:$12 sps:$4 sm:$0xff]   ;;  %v2125_v21 = vmov 0   ;;  %v105_v22 = vld [vmem:[%s2340_s1] sm:$0xff] }
  0x65   :  { %1733 = vmatprep.subr.bf16.mxu0 %v1860_v28  ;;  %v106_v23 = vunpack.c.l.bf16 %v105_v22  ;;  %v107_v24 = vunpack.c.h.bf16 %v105_v22  ;;  %v1916_v51 = vld [vmem:[#allocation6 + $0x20] sm:$0xff]  }
  0x66   :  { %1754 = vmatpush3.bf16.msra.mxu1 %v1859_v27  ;;  %v1572_v27 = vld [vmem:[%s2342_s3] ss:$0 sm:$0xff] }
  0x67   :  { %1755 = vmatprep.subr.bf16.mxu1 %v1862_v30  ;;  %v1827_v25 = vpack.i.bf16 %v107_v24, %v106_v23 }
  0x68   :  { %1734 = vmatpush3.bf16.msra.mxu0 %v1861_v29 }
  0x69   :  { %1763 = vmatprep.subr.bf16.mxu0 %v1864_v36  ;;  %1828 = vrot.lane.b32.xlu0 %v1827_v25, %s2118_s4 }
  0x6a   :  { %1756 = vmatpush3.bf16.msra.mxu1 %v1863_v33 }
  0x6b   :  { %532 = vmatmul.mubr.bf16.vlgmr.msra.gmra.mrb[0].mxu0 %v99_v35  ;;  %798 = vmatprep.subr.bf16.mxu1 %v1882_v61 }
  0x6c   :  { %1764 = vmatpush3.bf16.msra.mxu0 %v1865_v39  ;;  %611 = vmatprep.mubr.bf16.mxu0 %v104_v53  ;;  %v1918_v53 = vld [vmem:[#allocation6 + $0x30] sm:$0xff]  }
  0x6d   :  { %572 = vmatmul.mubr.bf16.vlgmr.msra.gmra.mrb[0].mxu1 %v101_v41  ;;  %1765 = vmatprep.subr.bf16.mxu0 %v1866_v42 }
  0x6e   :  { %799 = vmatpush1.bf16.msra.mxu1 %v1880_v60  ;;  %830 = vmatprep.mubr.bf16.mxu1 %v2125_v21 }
  0x6f   :  { %800 = vmatprep.subr.bf16.mxu1 %v1886_v0 }
  0x70   :  { %1766 = vmatpush3.bf16.msra.mxu0 %v1867_v43 }
  0x71   :  { %1767 = vmatprep.subr.bf16.mxu0 %v1868_v44 }
  0x72   :  { %801 = vmatpush1.bf16.msra.mxu1 %v1884_v1  ;;  %v1923_v1 = vld [vmem:[#allocation6 + $0x58] sm:$0xff]  }
  0x73   :  { %802 = vmatprep.subr.bf16.mxu1 %v1890_v3 }
  0x74   :  { %1768 = vmatpush3.bf16.msra.mxu0 %v1869_v45 }
  0x75   :  { %1769 = vmatprep.subr.bf16.mxu0 %v1870_v46 }
  0x76   :  { %803 = vmatpush1.bf16.msra.mxu1 %v1888_v4 }
  0x77   :  { %804 = vmatprep.subr.bf16.mxu1 %v1894_v6 }
  0x78   :  { %1770 = vmatpush3.bf16.msra.mxu0 %v1871_v47  ;;  %v1912_v47 = vld [vmem:[#allocation6] sm:$0xff]  }
  0x79   :  { %1771 = vmatprep.subr.bf16.mxu0 %v1872_v48  ;;  %v1913_v48 = vld [vmem:[#allocation6 + $0x8] sm:$0xff]  }
  0x7a   :  { %805 = vmatpush1.bf16.msra.mxu1 %v1892_v7  ;;  %v1924_v7 = vld [vmem:[#allocation7] ss:$24 sps:$4 sm:$0xff]  }
  0x7b   :  { %806 = vmatprep.subr.bf16.mxu1 %v1898_v9  ;;  %v1929_v9 = vld [vmem:[#allocation7 + $0xc] ss:$24 sps:$4 sm:$0xff]  }
  0x7c   :  { %1772 = vmatpush3.bf16.msra.mxu0 %v1873_v49  ;;  %v1914_v49 = vld [vmem:[#allocation6 + $0x10] sm:$0xff]  }
  0x7d   :  { %1773 = vmatprep.subr.bf16.mxu0 %v1874_v50  ;;  %v1915_v50 = vld [vmem:[#allocation6 + $0x18] sm:$0xff]  }
  0x7e   :  { %807 = vmatpush1.bf16.msra.mxu1 %v1896_v10  ;;  %v1932_v10 = vld [vmem:[#allocation7 + $0x34] ss:$24 sps:$4 sm:$0xff]  }
  0x7f   :  { %808 = vmatprep.subr.bf16.mxu1 %v1902_v12 }
  0x80   :  { %1774 = vmatpush3.bf16.msra.mxu0 %v1875_v52  ;;  %v1917_v52 = vld [vmem:[#allocation6 + $0x28] sm:$0xff]  }
  0x81   :  { %1775 = vmatprep.subr.bf16.mxu0 %v1876_v54  ;;  %v1919_v54 = vld [vmem:[#allocation6 + $0x38] sm:$0xff]  }
  0x82   :  { %809 = vmatpush1.bf16.msra.mxu1 %v1900_v13 }
  0x83   :  { %810 = vmatprep.subr.bf16.mxu1 %v1906_v15 }
  0x84   :  { %1776 = vmatpush3.bf16.msra.mxu0 %v1877_v55  ;;  %v1920_v55 = vld [vmem:[#allocation6 + $0x40] sm:$0xff]  }
  0x85   :  { %1777 = vmatprep.subr.bf16.mxu0 %v1878_v56  ;;  %v1921_v56 = vld [vmem:[#allocation6 + $0x48] sm:$0xff]  }
  0x86   :  { %811 = vmatpush1.bf16.msra.mxu1 %v1904_v16 }
  0x87   :  { %812 = vmatprep.subr.bf16.mxu1 %v1910_v18  ;;  %v1930_v18 = vld [vmem:[#allocation7 + $0x30] ss:$24 sps:$4 sm:$0xff]  }
  0x88   :  { %1778 = vmatpush3.bf16.msra.mxu0 %v1879_v57  ;;  %v655_v57 = vlaneseq }
  0x89   :  { %1794 = vmatprep.subr.bf16.mxu0 %v2124_v62 }
  0x8a   :  { %813 = vmatpush1.bf16.msra.mxu1 %v1908_v19  ;;  %v2284_v58 = vshrl.u32 %v655_v57, 7  ;;  %v1968_v57 = vld [vmem:[#allocation7 + $0x154] ss:$24 sps:$4 sm:$0xff]  }
  0x8b   :  { %612 = vmatmul.mubr.bf16.vlgmr.msra.gmra.mrb[4].mxu0 %v103_v59  ;;  %1010 = vmatprep.subr.bf16.mxu1 %v2125_v21  ;;  %v1922_v59 = vld [vmem:[#allocation6 + $0x50] sm:$0xff]  }
  0x8c   :  { %1795 = vmatpush3.bf16.msra.mxu0 %v1883_v63  ;;  %1810 = vmatprep.mubr.msk.bf16.mxu0 %vm2126_vm0, %v2124_v62  ;;  %v657_v61 = vsub.s32 0, %v2284_v58  ;;  %v653_v63 = vld [vmem:[%s2344_s5] sm:$0x7]  ;;  %v661_v0 = vsub.s32 1, %v2284_v58 }
  0x8d   :  { %1796 = vmatprep.subr.bf16.mxu0 %v2124_v62 }
  0x8e   :  { %v658_v4 = vrot.slane %v653_v63, %v657_v61  ;;  %v662_v6 = vrot.slane %v653_v63, %v661_v0 }
  0x90   :  { %1797 = vmatpush3.bf16.msra.mxu0 %v1887_v2 }
  0x91   :  { %1798 = vmatprep.subr.bf16.mxu0 %v2124_v62 }
  0x94   :  { %1799 = vmatpush3.bf16.msra.mxu0 %v1891_v5 }
  0x95   :  { %1800 = vmatprep.subr.bf16.mxu0 %v2124_v62 }
  0x98   :  { %1801 = vmatpush3.bf16.msra.mxu0 %v1895_v8  ;;  %v1926_v8 = vld [vmem:[#allocation7 + $0x4] ss:$24 sps:$4 sm:$0xff]  }
  0x99   :  { %1802 = vmatprep.subr.bf16.mxu0 %v2124_v62 }
  0x9c   :  { %1803 = vmatpush3.bf16.msra.mxu0 %v1899_v11 }
  0x9d   :  { %1804 = vmatprep.subr.bf16.mxu0 %v2124_v62 }
  0xa0   :  { %1805 = vmatpush3.bf16.msra.mxu0 %v1903_v14 }
  0xa1   :  { %1806 = vmatprep.subr.bf16.mxu0 %v2124_v62 }
  0xa4   :  { %1807 = vmatpush3.bf16.msra.mxu0 %v1907_v17 }
  0xa5   :  { %1808 = vmatprep.subr.bf16.mxu0 %v2124_v62  ;;  %v665_v62 = vsub.s32 2, %v2284_v58 }
  0xa7   :  { %v666_v5 = vrot.slane %v653_v63, %v665_v62  ;;  %v1969_v63 = vld [vmem:[#allocation7 + $0x158] ss:$24 sps:$4 sm:$0xff]  }
  0xa8   :  { %1809 = vmatpush3.bf16.msra.mxu0 %v1911_v20 }
  0xa9   :  { %1372 = vmatprep.subr.bf16.mxu0 %v1926_v8 }
  0xdb   :  { %v1829_v60 = vpop.permute.xlu0 %1828 }
  0xdc   :  { %v1831_v2 = vunpack.i.h.bf16 %v1829_v60  ;;  %v1830_v3 = vunpack.i.l.bf16 %v1829_v60  ;;  %v1971_v60 = vld [vmem:[#allocation7 + $0x15c] ss:$24 sps:$4 sm:$0xff]  }
  0xde   :  { %v886_v13 = vsel %vm885_vm1, %v1830_v3, %v1831_v2  ;;  %v1645_v2 = vld [vmem:[%s2346_s7] ss:$0 sm:$0xff] }
 0x13e   :  { %v1735_v26 = vpop.f32.mrb[0].mxu0 }
 0x13f   :  { %v1736_v28 = vpop.f32.mrb[1].mxu0 }
 0x140   :  { %v1737_v29 = vadd.f32 %v1736_v28, %v1735_v26  ;;  %v1738_v30 = vpop.f32.mrb[2].mxu0  ;;  %v1757_v31 = vpop.f32.mrb[0].mxu1  ;;  %v1938_v26 = vld [vmem:[#allocation7 + $0x64] ss:$24 sps:$4 sm:$0xff]   ;;  %v1936_v28 = vld [vmem:[#allocation7 + $0x60] ss:$24 sps:$4 sm:$0xff]  }
 0x141   :  { %v1739_v32 = vpop.f32.mrb[3].mxu0  ;;  %v1758_v34 = vpop.f32.mrb[1].mxu1  ;;  %v1942_v30 = vld [vmem:[#allocation7 + $0x90] ss:$24 sps:$4 sm:$0xff]  }
 0x142   :  { %v534_v33 = vadd.f32 %v1737_v29, %v1572_v27  ;;  %v1759_v35 = vadd.f32 %v1758_v34, %v1757_v31  ;;  %v1760_v36 = vpop.f32.mrb[2].mxu1  ;;  %v1944_v29 = vld [vmem:[#allocation7 + $0x94] ss:$24 sps:$4 sm:$0xff]   ;;  %v1950_v31 = vld [vmem:[#allocation7 + $0xc4] ss:$24 sps:$4 sm:$0xff]  }
 0x143   :  { %v1761_v37 = vpop.f32.mrb[3].mxu1  ;;  %v1948_v32 = vld [vmem:[#allocation7 + $0xc0] ss:$24 sps:$4 sm:$0xff]   ;;  %v1954_v34 = vld [vmem:[#allocation7 + $0xf0] ss:$24 sps:$4 sm:$0xff]  }
 0x144   :  { %v574_v38 = vadd.f32 %v1759_v35, %v534_v33  ;;  %v1956_v33 = vld [vmem:[#allocation7 + $0xf4] ss:$24 sps:$4 sm:$0xff]   ;;  %v1962_v35 = vld [vmem:[#allocation7 + $0x124] ss:$24 sps:$4 sm:$0xff]   ;;  %v1960_v36 = vld [vmem:[#allocation7 + $0x120] ss:$24 sps:$4 sm:$0xff]  }
 0x15e   :  { %v1779_v39 = vpop.f32.mrb[4].mxu0 }
 0x15f   :  { %v1780_v40 = vpop.f32.mrb[5].mxu0 }
 0x160   :  { %v1781_v41 = vadd.f32 %v1780_v40, %v1779_v39  ;;  %v1782_v42 = vpop.f32.mrb[6].mxu0 }
 0x161   :  { %v1783_v43 = vpop.f32.mrb[7].mxu0 }
 0x162   :  { %v614_v44 = vadd.f32 %v1781_v41, %v574_v38  ;;  %v1927_v43 = vld [vmem:[#allocation7 + $0x8] ss:$24 sps:$4 sm:$0xff]  }
 0x164   :  { %v619_v45 = vmax.f32 %v614_v44, 0.0 }
 0x166   :  { %v620_v46 = vpack.c.bf16 %v619_v45, %v619_v45  ;;  %v1935_v45 = vld [vmem:[#allocation7 + $0x3c] ss:$24 sps:$4 sm:$0xff]  }
 0x168   :  { %831 = vmatmul.mubr.bf16.vlgmr.msra.gmra.mrb[4].mxu1 %v620_v46  ;;  %1811 = vmatmul.mubr.bf16.vlgmr.msra.gmra.mrb[8].mxu0 %v620_v46  ;;  %v1933_v46 = vld [vmem:[#allocation7 + $0x38] ss:$24 sps:$4 sm:$0xff]  }
 0x169   :  { %1404 = vmatprep.mubr.bf16.mxu0 %v2125_v21  ;;  %1011 = vmatpush1.bf16.msra.mxu1 %v1912_v47  ;;  %v1941_v47 = vld [vmem:[#allocation7 + $0x6c] ss:$24 sps:$4 sm:$0xff]  }
 0x16a   :  { %1012 = vmatprep.subr.bf16.mxu1 %v2125_v21  ;;  %1373 = vmatpush1.bf16.msra.mxu0 %v1924_v7 }
 0x16b   :  { %1374 = vmatprep.subr.bf16.mxu0 %v1932_v10 }
 0x16d   :  { %1013 = vmatpush1.bf16.msra.mxu1 %v1913_v48  ;;  %v1939_v48 = vld [vmem:[#allocation7 + $0x68] ss:$24 sps:$4 sm:$0xff]  }
 0x16e   :  { %1014 = vmatprep.subr.bf16.mxu1 %v2125_v21  ;;  %1375 = vmatpush1.bf16.msra.mxu0 %v1930_v18  ;;  %v1984_v18 = vld [vmem:[#allocation7 + $0xd0] ss:$24 sps:$4 sm:$0xff]  }
 0x16f   :  { %1376 = vmatprep.subr.bf16.mxu0 %v1938_v26  ;;  %v1116_v26 = vsub.s32 3, %v2284_v58 }
 0x171   :  { %1015 = vmatpush1.bf16.msra.mxu1 %v1914_v49  ;;  %v1947_v49 = vld [vmem:[#allocation7 + $0x9c] ss:$24 sps:$4 sm:$0xff]  }
 0x172   :  { %1016 = vmatprep.subr.bf16.mxu1 %v2125_v21  ;;  %1377 = vmatpush1.bf16.msra.mxu0 %v1936_v28 }
 0x173   :  { %1378 = vmatprep.subr.bf16.mxu0 %v1944_v29 }
 0x175   :  { %1017 = vmatpush1.bf16.msra.mxu1 %v1915_v50  ;;  %v1945_v50 = vld [vmem:[#allocation7 + $0x98] ss:$24 sps:$4 sm:$0xff]  }
 0x176   :  { %1018 = vmatprep.subr.bf16.mxu1 %v2125_v21  ;;  %1379 = vmatpush1.bf16.msra.mxu0 %v1942_v30 }
 0x177   :  { %1380 = vmatprep.subr.bf16.mxu0 %v1950_v31 }
 0x179   :  { %1019 = vmatpush1.bf16.msra.mxu1 %v1916_v51  ;;  %v1953_v51 = vld [vmem:[#allocation7 + $0xcc] ss:$24 sps:$4 sm:$0xff]  }
 0x17a   :  { %1020 = vmatprep.subr.bf16.mxu1 %v2125_v21  ;;  %1381 = vmatpush1.bf16.msra.mxu0 %v1948_v32 }
 0x17b   :  { %1382 = vmatprep.subr.bf16.mxu0 %v1956_v33 }
 0x17d   :  { %1021 = vmatpush1.bf16.msra.mxu1 %v1917_v52  ;;  %v1951_v52 = vld [vmem:[#allocation7 + $0xc8] ss:$24 sps:$4 sm:$0xff]  }
 0x17e   :  { %1022 = vmatprep.subr.bf16.mxu1 %v2125_v21  ;;  %1383 = vmatpush1.bf16.msra.mxu0 %v1954_v34 }
 0x17f   :  { %1384 = vmatprep.subr.bf16.mxu0 %v1962_v35 }
 0x181   :  { %1023 = vmatpush1.bf16.msra.mxu1 %v1918_v53  ;;  %v1959_v53 = vld [vmem:[#allocation7 + $0xfc] ss:$24 sps:$4 sm:$0xff]  }
 0x182   :  { %1024 = vmatprep.subr.bf16.mxu1 %v2125_v21  ;;  %1385 = vmatpush1.bf16.msra.mxu0 %v1960_v36 }
 0x183   :  { %1386 = vmatprep.subr.bf16.mxu0 %v1968_v57 }
 0x185   :  { %1025 = vmatpush1.bf16.msra.mxu1 %v1919_v54  ;;  %v1957_v54 = vld [vmem:[#allocation7 + $0xf8] ss:$24 sps:$4 sm:$0xff]  }
 0x186   :  { %1026 = vmatprep.subr.bf16.mxu1 %v2125_v21 }
 0x189   :  { %1027 = vmatpush1.bf16.msra.mxu1 %v1920_v55  ;;  %v1965_v55 = vld [vmem:[#allocation7 + $0x12c] ss:$24 sps:$4 sm:$0xff]  }
 0x18a   :  { %1028 = vmatprep.subr.bf16.mxu1 %v2125_v21 }
 0x18d   :  { %1029 = vmatpush1.bf16.msra.mxu1 %v1921_v56  ;;  %v1963_v56 = vld [vmem:[#allocation7 + $0x128] ss:$24 sps:$4 sm:$0xff]  }
 0x18e   :  { %1030 = vmatprep.subr.bf16.mxu1 %v2125_v21 }
 0x191   :  { %1031 = vmatpush1.bf16.msra.mxu1 %v1922_v59  ;;  %v1966_v59 = vld [vmem:[#allocation7 + $0x150] ss:$24 sps:$4 sm:$0xff]  }
 0x192   :  { %1032 = vmatprep.subr.bf16.mxu1 %v2125_v21  ;;  %1387 = vmatpush1.bf16.msra.mxu0 %v1966_v59 }
 0x195   :  { %1033 = vmatpush1.bf16.msra.mxu1 %v1923_v1  ;;  %v1974_v1 = vld [vmem:[#allocation7 + $0x14] ss:$24 sps:$4 sm:$0xff]  }
 0x196   :  { %1413 = vmatprep.subr.bf16.mxu1 %v1929_v9  ;;  %1454 = vmatprep.subr.bf16.mxu0 %v1974_v1  ;;  %v1972_v9 = vld [vmem:[#allocation7 + $0x10] ss:$24 sps:$4 sm:$0xff]  }
 0x23b   :  { %v832_v11 = vpop.f32.mrb[4].mxu1  ;;  %v873_v12 = vpop.f32.mrb[8].mxu0 }
 0x23c   :  { %v833_v14 = vadd.f32 %v832_v11, %v658_v4  ;;  %v874_v15 = vadd.f32 %v873_v12, %v666_v5  ;;  %v834_v16 = vpop.f32.mrb[5].mxu1  ;;  %v1812_v17 = vpop.f32.mrb[9].mxu0  ;;  %v1977_v11 = vld [vmem:[#allocation7 + $0x44] ss:$24 sps:$4 sm:$0xff]   ;;  %v1975_v12 = vld [vmem:[#allocation7 + $0x40] ss:$24 sps:$4 sm:$0xff]  }
 0x23d   :  { %v835_v19 = vadd.f32 %v834_v16, %v662_v6  ;;  %v836_v20 = vpop.f32.mrb[6].mxu1  ;;  %v876_v22 = vpop.f32.mrb[10].mxu0  ;;  %v1981_v16 = vld [vmem:[#allocation7 + $0xa0] ss:$24 sps:$4 sm:$0xff]   ;;  %v1986_v17 = vld [vmem:[#allocation7 + $0xd4] ss:$24 sps:$4 sm:$0xff]  }
 0x23e   :  { %1558 = vst [vmem:[%s2350_s11] sm:$0xff] %v833_v14  ;;  %1560 = vst [vmem:[%s2350_s11 + $0x10] sm:$0xff] %v874_v15  ;;  %v837_v23 = vpop.f32.mrb[7].mxu1  ;;  %v1813_v24 = vpop.f32.mrb[11].mxu0  ;;  %v890_v25 = vmul.f32 %v886_v13, %v874_v15  ;;  %v1980_v13 = vld [vmem:[#allocation7 + $0x74] ss:$24 sps:$4 sm:$0xff]  }
 0x23f   :  { %1559 = vst [vmem:[%s2350_s11 + $0x8] sm:$0xff] %v835_v19  ;;  %v889_v27 = vmul.f32 %v1830_v3, %v835_v19  ;;  %v1983_v15 = vld [vmem:[#allocation7 + $0xa4] ss:$24 sps:$4 sm:$0xff]   ;;  %v1987_v20 = vld [vmem:[#allocation7 + $0x100] ss:$24 sps:$4 sm:$0xff]  }
 0x240   :  { %895 = vrot.lane.b32.xlu1 %v890_v25, %s2118_s4  ;;  %v1992_v22 = vld [vmem:[#allocation7 + $0x134] ss:$24 sps:$4 sm:$0xff]   ;;  %v1995_v23 = vld [vmem:[#allocation7 + $0x164] ss:$24 sps:$4 sm:$0xff]   ;;  %v1993_v24 = vld [vmem:[#allocation7 + $0x160] ss:$24 sps:$4 sm:$0xff]  }
 0x241   :  { %893 = vrot.lane.b32.xlu0 %v889_v27, %s2118_s4  ;;  %v1100_v25 = vld [vmem:[%s2348_s9] sm:$0x3f] }
 0x242   :  { %v1105_v27 = vrot.slane %v1100_v25, %v657_v61  ;;  %v1113_v28 = vrot.slane %v1100_v25, %v665_v62  ;;  %v1109_v29 = vrot.slane %v1100_v25, %v661_v0  ;;  %v1117_v30 = vrot.slane %v1100_v25, %v1116_v26 }
 0x2b2   :  { %v896_v37 = vpop.permute.xlu1 %895 }
 0x2b3   :  { %v901_v38 = vadd.f32 %v896_v37, %v835_v19  ;;  %v894_v39 = vpop.permute.xlu0 %893  ;;  %v1989_v19 = vld [vmem:[#allocation7 + $0x104] ss:$24 sps:$4 sm:$0xff]  }
 0x2b4   :  { %v897_v40 = vsel %vm885_vm1, %v894_v39, %v896_v37 }
 0x2b5   :  { %v903_v41 = vpack.c.bf16 %v901_v38, %v901_v38  ;;  %v900_v42 = vadd.f32 %v897_v40, %v833_v14  ;;  %v1978_v14 = vld [vmem:[#allocation7 + $0x70] ss:$24 sps:$4 sm:$0xff]  }
 0x2b7   :  { %v902_v44 = vpack.c.bf16 %v900_v42, %v900_v42  ;;  %1658 = vmatprep.mubr.msk.bf16.mxu1 %vm885_vm1, %v903_v41 }
 0x2b9   :  { %1043 = vmatmul.mubr.bf16.vlgmr.msra.gmra.mrb[8].mxu1 %v902_v44 }
 0x2ba   :  { %1414 = vmatpush1.bf16.msra.mxu1 %v1927_v43  ;;  %1445 = vmatprep.mubr.bf16.mxu1 %v2125_v21 }
 0x2bb   :  { %1415 = vmatprep.subr.bf16.mxu1 %v1935_v45 }
 0x2be   :  { %1416 = vmatpush1.bf16.msra.mxu1 %v1933_v46 }
 0x2bf   :  { %1417 = vmatprep.subr.bf16.mxu1 %v1941_v47 }
 0x2c2   :  { %1418 = vmatpush1.bf16.msra.mxu1 %v1939_v48 }
 0x2c3   :  { %1419 = vmatprep.subr.bf16.mxu1 %v1947_v49 }
 0x2c6   :  { %1420 = vmatpush1.bf16.msra.mxu1 %v1945_v50 }
 0x2c7   :  { %1421 = vmatprep.subr.bf16.mxu1 %v1953_v51 }
 0x2ca   :  { %1422 = vmatpush1.bf16.msra.mxu1 %v1951_v52  ;;  %v1120_v52 = vsub.s32 4, %v2284_v58 }
 0x2cb   :  { %1423 = vmatprep.subr.bf16.mxu1 %v1959_v53  ;;  %v1124_v53 = vsub.s32 5, %v2284_v58 }
 0x2cd   :  { %v1125_v59 = vrot.slane %v1100_v25, %v1124_v53 }
 0x2ce   :  { %1424 = vmatpush1.bf16.msra.mxu1 %v1957_v54 }
 0x2cf   :  { %1425 = vmatprep.subr.bf16.mxu1 %v1965_v55 }
 0x2d2   :  { %1426 = vmatpush1.bf16.msra.mxu1 %v1963_v56  ;;  %v1121_v56 = vrot.slane %v1100_v25, %v1120_v52 }
 0x2d3   :  { %1427 = vmatprep.subr.bf16.mxu1 %v1971_v60 }
 0x2d6   :  { %1428 = vmatpush1.bf16.msra.mxu1 %v1969_v63 }
 0x38c   :  { %v1044_v3 = vpop.f32.mrb[8].mxu1 }
 0x38d   :  { %v1045_v4 = vadd.f32 %v1645_v2, %v1044_v3  ;;  %v1046_v5 = vpop.f32.mrb[9].mxu1 }
 0x38e   :  { %v1047_v6 = vpop.f32.mrb[10].mxu1 }
 0x38f   :  { %v1050_v7 = vmax.f32 %v1045_v4, 0.0  ;;  %v1048_v8 = vpop.f32.mrb[11].mxu1 }
 0x391   :  { %v1051_v10 = vpack.c.bf16 %v1050_v7, %v1050_v7 }
 0x393   :  { %1405 = vmatmul.mubr.bf16.vlgmr.msra.gmra.mrb[12].mxu0 %v1051_v10  ;;  %1446 = vmatmul.mubr.bf16.vlgmr.msra.gmra.mrb[12].mxu1 %v1051_v10 }
 0x394   :  { %1455 = vmatpush1.bf16.msra.mxu0 %v1972_v9  ;;  %1486 = vmatprep.mubr.bf16.mxu0 %v2125_v21  ;;  %v1990_v21 = vld [vmem:[#allocation7 + $0x130] ss:$24 sps:$4 sm:$0xff]  }
 0x395   :  { %1456 = vmatprep.subr.bf16.mxu0 %v1977_v11 }
 0x398   :  { %1457 = vmatpush1.bf16.msra.mxu0 %v1975_v12 }
 0x399   :  { %1458 = vmatprep.subr.bf16.mxu0 %v1980_v13 }
 0x39c   :  { %1459 = vmatpush1.bf16.msra.mxu0 %v1978_v14 }
 0x39d   :  { %1460 = vmatprep.subr.bf16.mxu0 %v1983_v15 }
 0x3a0   :  { %1461 = vmatpush1.bf16.msra.mxu0 %v1981_v16 }
 0x3a1   :  { %1462 = vmatprep.subr.bf16.mxu0 %v1986_v17 }
 0x3a4   :  { %1463 = vmatpush1.bf16.msra.mxu0 %v1984_v18 }
 0x3a5   :  { %1464 = vmatprep.subr.bf16.mxu0 %v1989_v19 }
 0x3a8   :  { %1465 = vmatpush1.bf16.msra.mxu0 %v1987_v20 }
 0x3a9   :  { %1466 = vmatprep.subr.bf16.mxu0 %v1992_v22 }
 0x3ac   :  { %1467 = vmatpush1.bf16.msra.mxu0 %v1990_v21 }
 0x3ad   :  { %1468 = vmatprep.subr.bf16.mxu0 %v1995_v23 }
 0x3b0   :  { %1469 = vmatpush1.bf16.msra.mxu0 %v1993_v24 }
 0x3b3   :  { %1487 = vmatmul.mubr.bf16.vlgmr.msra.gmra.mrb[16].mxu0 %v1051_v10 }
 0x466   :  { %v1406_v31 = vpop.f32.mrb[12].mxu0  ;;  %v1447_v32 = vpop.f32.mrb[12].mxu1 }
 0x467   :  { %v1407_v33 = vadd.f32 %v1406_v31, %v1105_v27  ;;  %v1448_v34 = vadd.f32 %v1447_v32, %v1113_v28  ;;  %v1408_v35 = vpop.f32.mrb[13].mxu0  ;;  %v1449_v36 = vpop.f32.mrb[13].mxu1 }
 0x468   :  { %v1409_v37 = vadd.f32 %v1408_v35, %v1109_v29  ;;  %v1450_v38 = vadd.f32 %v1449_v36, %v1117_v30  ;;  %v1410_v39 = vpop.f32.mrb[14].mxu0  ;;  %v1451_v40 = vpop.f32.mrb[14].mxu1 }
 0x469   :  { %v1707_v41 = vmul.f32 -1.442695, %v1407_v33  ;;  %v1709_v42 = vmul.f32 -1.442695, %v1448_v34  ;;  %v1411_v61 = vpop.f32.mrb[15].mxu0  ;;  %v1452_v43 = vpop.f32.mrb[15].mxu1 }
 0x46a   :  { %v1708_v44 = vmul.f32 -1.442695, %v1409_v37  ;;  %v1710_v62 = vmul.f32 -1.442695, %v1450_v38 }
 0x46b   :  { %1996 = vpow2.f32 %v1707_v41 }
 0x46c   :  { %1998 = vpow2.f32 %v1709_v42 }
 0x46d   :  { %2000 = vpow2.f32 %v1708_v44 }
 0x46e   :  { %2002 = vpow2.f32 %v1710_v62 }
 0x475   :  { %v1997_v0 = vpop.eup %1996 }
 0x476   :  { %v1999_v45 = vpop.eup %1998  ;;  %v1513_v46 = vadd.f32 1.0, %v1997_v0 }
 0x477   :  { %v2001_v47 = vpop.eup %2000  ;;  %v1515_v48 = vadd.f32 1.0, %v1999_v45 }
 0x478   :  { %v2003_v49 = vpop.eup %2002  ;;  %2004 = vrcp.f32 %v1513_v46  ;;  %v1514_v50 = vadd.f32 1.0, %v2001_v47 }
 0x479   :  { %2006 = vrcp.f32 %v1515_v48  ;;  %v1516_v51 = vadd.f32 1.0, %v2003_v49 }
 0x47a   :  { %2008 = vrcp.f32 %v1514_v50 }
 0x47b   :  { %2010 = vrcp.f32 %v1516_v51 }
 0x482   :  { %v2005_v54 = vpop.eup %2004 }
 0x483   :  { %v2007_v55 = vpop.eup %2006 }
 0x484   :  { %v2009_v57 = vpop.eup %2008 }
 0x485   :  { %v2011_v60 = vpop.eup %2010  ;;  %v1716_v63 = vpack.c.bf16 %v2009_v57, %v2005_v54 }
 0x486   :  { %v1717_v1 = vpack.c.bf16 %v2011_v60, %v2007_v55  ;;  %v1488_v2 = vpop.f32.mrb[16].mxu0 }
 0x487   :  { %1555 = vst [vmem:[%s2349_s10] sm:$0xff] %v1716_v63  ;;  %v1489_v3 = vadd.f32 %v1488_v2, %v1121_v56  ;;  %v1490_v4 = vpop.f32.mrb[17].mxu0 }
 0x488   :  { %1556 = vst [vmem:[%s2349_s10 + $0x8] sm:$0xff] %v1717_v1  ;;  %v1491_v58 = vadd.f32 %v1490_v4, %v1125_v59  ;;  %v1492_v5 = vpop.f32.mrb[18].mxu0 }
 0x489   :  { %v1711_v6 = vmul.f32 -1.442695, %v1489_v3  ;;  %v1493_v7 = vpop.f32.mrb[19].mxu0 }
 0x48a   :  { %v1712_v8 = vmul.f32 -1.442695, %v1491_v58 }
 0x48b   :  { %2012 = vpow2.f32 %v1711_v6 }
 0x48c   :  { %2014 = vpow2.f32 %v1712_v8 }
 0x495   :  { %v2013_v9 = vpop.eup %2012 }
 0x496   :  { %v2015_v10 = vpop.eup %2014  ;;  %v1517_v11 = vadd.f32 1.0, %v2013_v9 }
 0x497   :  { %v1518_v12 = vadd.f32 1.0, %v2015_v10 }
 0x498   :  { %2016 = vrcp.f32 %v1517_v11 }
 0x499   :  { %2018 = vrcp.f32 %v1518_v12 }
 0x4a2   :  { %v2017_v13 = vpop.eup %2016 }
 0x4a3   :  { %v2019_v14 = vpop.eup %2018 }
 0x4a4   :  { %v1718_v15 = vpack.c.bf16 %v2019_v14, %v2017_v13 }
 0x4a6   :  { %1557 = vst [vmem:[%s2349_s10 + $0x10] sm:$0xff] %v1718_v15 }
 0x4a7   :  { %1569 = vsyncpa [#allocation3], 1 }
 0x4a8   :  { %1570 = vsyncpa [#allocation5], 1 }
 0x4a9   :  { %1571 = vsyncpa [#allocation8], 1 }

</bundles_post_ra>
